<compile_context>
chip_gen: v7x
topology: tpu7x:2x2x1
jax: 0.10.0
libtpu: 0.0.40
codegen_flags: <defaults>
</compile_context>

<pallas_src>
import jax
import jax.numpy as jnp
from jax.experimental import pallas as pl
from jax.experimental.pallas import tpu as pltpu


def _translation_kernel(x_ref, t_ref, o_ref):
    # x_ref: (block_rows, block_cols) tile of embeddings in VMEM
    # t_ref: (1, block_cols) pre-cast translation slice (broadcast over rows)
    # o_ref: (block_rows, block_cols) output tile
    o_ref[...] = x_ref[...] + t_ref[...]


def _lane_pack_factor(n_rows: int, dim: int) -> int:
    """How many logical rows to fuse into one lane-dense row (only if dim < 128)."""
    if dim >= 128 or 128 % dim != 0:
        return 1
    base = 128 // dim
    for mult in (8, 4, 2, 1):          # prefer lane widths up to 1024
        k = base * mult
        if n_rows % k == 0:
            return k
    return 1


def translation_operator(embeddings: jax.Array, translation: jax.Array,
                         *, block_rows: int | None = None) -> jax.Array:
    """embeddings: (..., dim); translation: (dim,). Returns embeddings + translation."""
    dim = translation.shape[-1]
    assert embeddings.shape[-1] == dim, "last dim of embeddings must equal operator dim"

    orig_shape = embeddings.shape
    out_dtype = embeddings.dtype
    itemsize = jnp.dtype(out_dtype).itemsize

    x2d = embeddings.reshape(-1, dim)
    n_rows = x2d.shape[0]

    # Pre-cast once in the wrapper (torchbiggraph's parameter is f32 and is used
    # with f32 embeddings; we keep the add in the embedding dtype).
    t = translation.astype(out_dtype)

    # Lane-dense repacking when dim < 128: fold k rows into one (k*dim)-wide row.
    k = _lane_pack_factor(n_rows, dim)
    if k > 1:
        x2d = x2d.reshape(n_rows // k, k * dim)
        t = jnp.tile(t, k)
    n_rows_packed, lane_width = x2d.shape
    t2d = t.reshape(1, lane_width)

    # Column tiling only for very wide rows; block_cols stays a multiple of 128.
    MAX_BLOCK_COLS = 8192
    if lane_width > MAX_BLOCK_COLS and lane_width % 128 == 0:
        block_cols = MAX_BLOCK_COLS
    else:
        block_cols = lane_width

    # Row tiling: target ~4 MiB per tile, rounded to the dtype sublane quantum.
    quantum = max(8, (4 // itemsize) * 8)           # 8 f32 / 16 bf16 / 32 int8
    if block_rows is None:
        target_tile_bytes = 4 * 1024 * 1024
        rows_fit = max(1, target_tile_bytes // (block_cols * itemsize))
        block_rows = max(quantum, (rows_fit // quantum) * quantum)
    else:
        block_rows = max(quantum, ((block_rows + quantum - 1) // quantum) * quantum)
    if block_rows >= n_rows_packed:
        block_rows = n_rows_packed                  # single full-extent row block

    grid = (pl.cdiv(n_rows_packed, block_rows), pl.cdiv(lane_width, block_cols))

    out = pl.pallas_call(
        _translation_kernel,
        out_shape=jax.ShapeDtypeStruct((n_rows_packed, lane_width), out_dtype),
        grid_spec=pltpu.PrefetchScalarGridSpec(
            num_scalar_prefetch=0,
            grid=grid,
            in_specs=[
                pl.BlockSpec((block_rows, block_cols), lambda i, j: (i, j)),
                pl.BlockSpec((1, block_cols), lambda i, j: (0, j)),
            ],
            out_specs=pl.BlockSpec((block_rows, block_cols), lambda i, j: (i, j)),
        ),
        compiler_params=pltpu.CompilerParams(
            dimension_semantics=("parallel", "parallel"),
            vmem_limit_bytes=40 * 1024 * 1024,      # safe on v5e/v6e and under v7x's 64 MiB
        ),
    )(x2d, t2d)

    return out.reshape(orig_shape)


if __name__ == "__main__":
    key = jax.random.PRNGKey(0)
    k_emb, k_trans, k_emb2, k_trans2 = jax.random.split(key, 4)

    # --- case 1: small dim (lane-dense repacking path), matches module usage ---
    dim = 32
    embeddings = jax.random.normal(k_emb, (2, 8, dim), dtype=jnp.float32)
    # nn.Parameter(torch.zeros((dim,))) -> zeros at init; use a deterministic
    # non-trivial vector so the broadcast-add is actually exercised.
    translation = jax.random.normal(k_trans, (dim,), dtype=jnp.float32)

    out = translation_operator(embeddings, translation)
    out = jax.block_until_ready(out)
    ref = embeddings + translation
    assert out.shape == embeddings.shape
    assert out.dtype == embeddings.dtype
    assert jnp.allclose(out, ref, atol=1e-6, rtol=1e-6)

    # --- case 2: dim >= 128 with a ragged row grid (exercises masked OOB writes) ---
    dim2 = 256
    embeddings2 = jax.random.normal(k_emb2, (5, 4, dim2), dtype=jnp.float32)  # 20 rows
    translation2 = jax.random.normal(k_trans2, (dim2,), dtype=jnp.float32)
    out2 = translation_operator(embeddings2, translation2, block_rows=8)      # grid=(3,1), last block partial
    out2 = jax.block_until_ready(out2)
    ref2 = embeddings2 + translation2
    assert out2.shape == embeddings2.shape
    assert out2.dtype == embeddings2.dtype
    assert jnp.allclose(out2, ref2, atol=1e-6, rtol=1e-6)

    print("KERNEL_OK")
</pallas_src>

<mosaic_0001>
module attributes {stable_mosaic.version = 11 : i64} {
  func.func @_translation_kernel(%arg0: i32, %arg1: i32, %arg2: memref<1x512xf32, #tpu.memory_space<vmem>>, %arg3: memref<1x512xf32, #tpu.memory_space<vmem>>, %arg4: memref<1x512xf32, #tpu.memory_space<vmem>>) attributes {dimension_semantics = [#tpu.dimension_semantics<parallel>, #tpu.dimension_semantics<parallel>], iteration_bounds = array<i64: 1, 1>, scalar_prefetch = 0 : i64, scratch_operands = 0 : i64, tpu.core_type = #tpu.core_type<tc>, window_params = [{transform_indices = @transform_0, window_bounds = array<i64: 1, 512>}, {transform_indices = @transform_1, window_bounds = array<i64: 1, 512>}, {transform_indices = @transform_2, window_bounds = array<i64: 1, 512>}]} {
    %c0 = arith.constant 0 : index
    %c0_0 = arith.constant 0 : index
    %0 = vector.load %arg2[%c0, %c0_0] : memref<1x512xf32, #tpu.memory_space<vmem>>, vector<1x512xf32>
    %c0_1 = arith.constant 0 : index
    %c0_2 = arith.constant 0 : index
    %1 = vector.load %arg3[%c0_1, %c0_2] : memref<1x512xf32, #tpu.memory_space<vmem>>, vector<1x512xf32>
    %2 = arith.addf %0, %1 : vector<1x512xf32>
    %c0_3 = arith.constant 0 : index
    %c0_4 = arith.constant 0 : index
    %3 = vector.load %arg4[%c0_3, %c0_4] : memref<1x512xf32, #tpu.memory_space<vmem>>, vector<1x512xf32>
    tpu.vector_store %arg4[%c0_3, %c0_4], %2 {strides = array<i32>} : memref<1x512xf32, #tpu.memory_space<vmem>>, vector<1x512xf32>,
    return
  }
  func.func @transform_0(%arg0: i32, %arg1: i32) -> (i32, i32) {
    %c0_i32 = arith.constant 0 : i32
    return %arg0, %arg1 : i32, i32
  }
  func.func @transform_1(%arg0: i32, %arg1: i32) -> (i32, i32) {
    %c0_i32 = arith.constant 0 : i32
    %c0_i32_0 = arith.constant 0 : i32
    return %c0_i32, %arg1 : i32, i32
  }
  func.func @transform_2(%arg0: i32, %arg1: i32) -> (i32, i32) {
    %c0_i32 = arith.constant 0 : i32
    return %arg0, %arg1 : i32, i32
  }
}

</mosaic_0001>

<bundles_post_ra>
// kernel: tpu_custom_call.1
= control target key start
LH: loop header
LB: loop body
LE: loop exit
PB: predicated region body
PF: predicated region fallthrough
CT: control target
= control target key end

     0   :  { %7 = vsyncpa [#allocation3], 0  ;;  %s189_s0 = inlined_call_operand.hbm [shape: f32[1,512], index: 0, kind: input, shape index: {}]   ;;  %s190_s1 = inlined_call_operand.hbm [shape: f32[1,512], index: 1, kind: input, shape index: {}]   ;;  %s191_s2 = inlined_call_operand.hbm [shape: f32[1,512], index: 2, kind: output, shape index: {}]  }
   0x1   :  { %8 = vsyncpa [#allocation6], 0 }
   0x2   :  { %9 = vsyncpa [#allocation4], 0  ;;  %s135_s9 = smov [#allocation2]   ;;  %s136_s11 = smov [#allocation5]  }
   0x3   :  { %s16_s10 = sshll.u32 %s135_s9, 4  ;;  %s26_s12 = sshll.u32 %s136_s11, 4  ;;  %s17_s10 = int_to_ptr.vmem [resolvable:$true] %s16_s10  ;;  %s27_s12 = int_to_ptr.vmem [resolvable:$true] %s26_s12 }
   0x4   :  { %s63_s15 = scalar_lea.hbm %s189_s0, 64 }
   0x5   :  { %p64_p0 = scmp.ne.s32.totalorder %s189_s0, %s63_s15  ;;  %p67_p1 = scmp.lt.u32.totalorder %s63_s15, %s189_s0 }
   0x7   :  { %p69_p2 = pnand %p67_p1, %p64_p0 }
   0x9   :  { %72 = shalt.err (!%p69_p2)
}
   0xa   :  { %s73_s20 = scalar_lea.vmem %s17_s10, 64  ;;  %p78_p4 = scmp.lt.s32.totalorder %s17_s10, %s17_s10 }
   0xb   :  { %p74_p3 = scmp.ne.s32.totalorder %s17_s10, %s73_s20  ;;  %p79_p5 = scmp.lt.s32.totalorder %s73_s20, %s73_s20 }
   0xd   :  { %p80_p6 = por %p79_p5, %p78_p4 }
   0xf   :  { %p81_p7 = pnand %p80_p6, %p74_p3 }
  0x11   :  { %84 = shalt.err (!%p81_p7)
}
  0x12   :  { %19 = dma.hbm_to_vmem [thread:$0]  %s189_s0, 64, %s17_s10, [#allocation3]  }
  0x13   :  { %s85_s25 = scalar_lea.hbm %s190_s1, 64 }
  0x14   :  { %p86_p8 = scmp.ne.s32.totalorder %s190_s1, %s85_s25  ;;  %p89_p9 = scmp.lt.u32.totalorder %s85_s25, %s190_s1 }
  0x16   :  { %p91_p10 = pnand %p89_p9, %p86_p8 }
  0x18   :  { %94 = shalt.err (!%p91_p10)
}
  0x19   :  { %s95_s30 = scalar_lea.vmem %s27_s12, 64  ;;  %p100_p12 = scmp.lt.s32.totalorder %s27_s12, %s27_s12 }
  0x1a   :  { %p96_p11 = scmp.ne.s32.totalorder %s27_s12, %s95_s30  ;;  %p101_p13 = scmp.lt.s32.totalorder %s95_s30, %s95_s30 }
  0x1c   :  { %p102_p0 = por %p101_p13, %p100_p12 }
  0x1e   :  { %p103_p1 = pnand %p102_p0, %p96_p11 }
  0x20   :  { %106 = shalt.err (!%p103_p1)
}
  0x21   :  { %29 = dma.hbm_to_vmem [thread:$0]  %s190_s1, 64, %s27_s12, [#allocation6]  }
  0x22   :  { %129 = dma.done.wait [#allocation3], 64  }
  0x23   :  { %130 = vsyncadd [#allocation3], 4294967232 }
  0x24   :  { %131 = dma.done.wait [#allocation6], 64  }
  0x25   :  { %132 = vsyncadd [#allocation6], 4294967232  ;;  %v39_v0 = vlaneseq  ;;  %s137_s4 = smov [#allocation7]   ;;  %v36_v1 = vld [vmem:[#allocation2] sm:$0xf] }
  0x26   :  { %s50_s5 = sshll.u32 %s137_s4, 4  ;;  %v37_v2 = vld [vmem:[#allocation5] sm:$0xf]  ;;  %s51_s5 = int_to_ptr.vmem [resolvable:$true] %s50_s5 }
  0x27   :  { %vm41_vm0 = vcmp.lt.s32.totalorder %v39_v0, 512  ;;  %v38_v3 = vadd.f32 %v37_v2, %v36_v1  ;;  %s107_s6 = scalar_lea.vmem %s51_s5, 64  ;;  %p112_p3 = scmp.lt.s32.totalorder %s51_s5, %s51_s5 }
  0x28   :  { %p108_p2 = scmp.ne.s32.totalorder %s51_s5, %s107_s6  ;;  %p113_p4 = scmp.lt.s32.totalorder %s107_s6, %s107_s6 }
  0x29   :  { %43 = vst.msk [vmem:[#allocation7] sm:$0xf] %vm41_vm0, %v38_v3 }
  0x2a   :  { %p114_p5 = por %p113_p4, %p112_p3 }
  0x2c   :  { %p115_p6 = pnand %p114_p5, %p108_p2 }
  0x2e   :  { %118 = shalt.err (!%p115_p6)
}
  0x2f   :  { %s119_s8 = scalar_lea.hbm %s191_s2, 64 }
  0x30   :  { %p120_p7 = scmp.ne.s32.totalorder %s191_s2, %s119_s8  ;;  %p123_p8 = scmp.lt.u32.totalorder %s119_s8, %s191_s2 }
  0x32   :  { %p125_p9 = pnand %p123_p8, %p120_p7 }
  0x34   :  { %128 = shalt.err (!%p125_p9)
}
  0x35   :  { %53 = dma.vmem_to_hbm [thread:$0]  %s51_s5, 64, %s191_s2, [#allocation4]  }
  0x36   :  { %133 = dma.done.wait [#allocation4], 64  }
  0x37   :  { %134 = vsyncadd [#allocation4], 4294967232 }
  0x38   :  { %57 = vsyncpa [#allocation3], 1 }
  0x39   :  { %58 = vsyncpa [#allocation6], 1 }
  0x3a   :  { %59 = vsyncpa [#allocation4], 1 }

</bundles_post_ra>
